<compile_context>
chip_gen: v5e
topology: v5e:2x2
jax: 0.10.0
libtpu: 0.0.40
codegen_flags: <defaults>
</compile_context>

<pallas_src>
import functools

import jax
import jax.numpy as jnp
from jax import lax
from jax.experimental import pallas as pl
from jax.experimental.pallas import tpu as pltpu


def attention_head_kernel(x_ref, w_ref, bw_ref, v_ref, o_ref, *, fused_3d_matmul):
    # x_ref  : (TB, S, F)  features block (compute dtype, bf16 by default)
    # w_ref  : (F, Hp)     W.weight transposed, lane-padded (compute dtype)
    # bw_ref : (1, Hp)     W.bias, zero-padded, f32
    # v_ref  : (1, Hp)     V.weight row, zero-padded, f32
    # o_ref  : (TB, F)     context vectors
    TB, S, F = x_ref.shape
    Hp = w_ref.shape[1]

    x = x_ref[...]                                            # (TB, S, F)
    cdt = x.dtype

    # att = tanh(x @ W + bW): one MXU contraction over F with M = TB*S rows,
    # f32 accumulation.
    if fused_3d_matmul:
        pre = lax.dot_general(
            x, w_ref[...],
            dimension_numbers=(((2,), (0,)), ((), ())),
            preferred_element_type=jnp.float32,
        )                                                     # (TB, S, Hp) f32
    else:
        # Reshape path: a pure relayout no-op whenever S is a multiple of the
        # sublane tile (8 f32 / 16 bf16), which holds for RoBERTa sequence
        # lengths; tiny copy otherwise.
        pre = jnp.dot(
            x.reshape(TB * S, F), w_ref[...],
            preferred_element_type=jnp.float32,
        ).reshape(TB, S, Hp)
    att = jnp.tanh(pre + bw_ref[...])                         # (TB, S, Hp) f32

    # score = att @ V : N=1 matmul replaced by VPU multiply + XLU lane reduce.
    # att is narrowed to the compute dtype (halves the biggest in-kernel
    # intermediate on v6e/v7x); accumulation stays f32.  The V bias is omitted
    # because softmax is shift-invariant, so it cancels exactly.
    score = jnp.sum(att.astype(cdt) * v_ref[...].astype(cdt),
                    axis=-1, dtype=jnp.float32)               # (TB, S)

    # Softmax over the sequence axis (lane-dense: S on lanes).
    m = jnp.max(score, axis=-1, keepdims=True)                # (TB, 1)
    e = jnp.exp(score - m)                                    # (TB, S)
    denom = jnp.sum(e, axis=-1, keepdims=True)                # (TB, 1)
    attn_w = e * pl.reciprocal(denom, approx=False)           # exact; TB values

    # context = sum over seq of attn * features: multiply in the native
    # (compute) dtype, accumulate in f32 — no f32 copy of the features block.
    ctx = jnp.sum(attn_w.astype(cdt)[:, :, None] * x,
                  axis=1, dtype=jnp.float32)                  # (TB, F) f32
    o_ref[...] = ctx.astype(o_ref.dtype)


def _vmem_capacity_bytes():
    """Physical per-core VMEM; conservative fallback if the query fails."""
    try:
        return int(pltpu.get_tpu_info().vmem_capacity_bytes)
    except Exception:
        return 64 * 1024 * 1024          # v7x per-TC size: smallest current gen


def _footprint_bytes(tb, S, F, Hp, x_item, out_item, feat_bufs=2):
    """Accounted VMEM footprint of one grid step."""
    feat = feat_bufs * tb * S * F * x_item      # pipelined features block
    att_f32 = tb * S * Hp * 4                   # f32 tanh output (peak)
    att_c = tb * S * Hp * x_item                # compute-dtype copy for V reduce
    out = 2 * tb * F * out_item                 # double-buffered output block
    ctx = tb * F * 4                            # f32 context accumulator
    w = F * Hp * x_item                         # resident W (single-buffered)
    misc = 2 * Hp * 4 + 4 * tb * S * 4          # bias / V rows + softmax temps
    return feat + att_f32 + att_c + out + ctx + w + misc


def _pick_block_b(B, S, F, Hp, x_item, out_item, feat_bufs=2):
    """Largest batch tile that divides B, is sublane-aligned, and fits VMEM."""
    budget = int(_vmem_capacity_bytes() * 0.7)  # headroom for compiler temps
    align = 16 if out_item < 4 else 8           # (TB, F) output sublane rule

    # Keep >= 2 grid steps when possible (megacore sharding / v7x dual TC).
    cap = B // 2 if B >= 2 * align else B

    def aligned(t):
        return t % align == 0 or t == B

    for t in range(cap, 0, -1):
        if B % t == 0 and aligned(t) and \
           _footprint_bytes(t, S, F, Hp, x_item, out_item, feat_bufs) <= budget:
            return t
    # Nothing fits the budget: smallest aligned divisor; the explicit
    # vmem_limit_bytes below is raised to cover the resulting footprint.
    for t in range(1, B + 1):
        if B % t == 0 and aligned(t):
            return t
    return B


def attention_head(features, w, bw, v, bv=None, *, block_b=None,
                   compute_dtype=jnp.bfloat16, feature_buffers=None):
    """features: (B, S, F); w: (F, H) = W.weight.T; bw: (H,); v: (H, 1) = V.weight.T.

    `bv` is accepted for API parity but unused: softmax is shift-invariant, so
    the V bias provably cancels.  Pass compute_dtype=None for f32 end to end.
    `feature_buffers` optionally deepens the features pipeline (e.g. 3 on v6e
    if the trace still shows exposed DMA).
    """
    B, S, F = features.shape
    H = w.shape[1]
    out_dtype = features.dtype

    # bf16 features / W by default: halves the dominant HBM stream and runs
    # the MXU at its native bf16 rate; accumulation inside the kernel is f32.
    if compute_dtype is not None and features.dtype != compute_dtype:
        features_c = features.astype(compute_dtype)
        w_c = w.astype(compute_dtype)
    else:
        features_c, w_c = features, w

    # Zero-pad H to a lane-aligned multiple of 128 (MXU column utilisation and
    # lane-dense bias / V rows).  Padded columns: tanh(0 + 0) * 0 == 0, so the
    # result is unchanged.  No-op for RoBERTa-base (H = 768).
    Hp = max(128, ((H + 127) // 128) * 128)
    bw_f = bw.reshape(-1).astype(jnp.float32)
    v_f = v.reshape(-1).astype(jnp.float32)
    if Hp != H:
        w_c = jnp.pad(w_c, ((0, 0), (0, Hp - H)))
        bw_f = jnp.pad(bw_f, (0, Hp - H))
        v_f = jnp.pad(v_f, (0, Hp - H))
    bw2 = bw_f.reshape(1, Hp)
    v_row = v_f.reshape(1, Hp)

    x_item = jnp.dtype(features_c.dtype).itemsize
    out_item = jnp.dtype(out_dtype).itemsize
    feat_bufs = feature_buffers if feature_buffers is not None else 2

    TB = block_b if block_b is not None else _pick_block_b(
        B, S, F, Hp, x_item, out_item, feat_bufs)
    assert B % TB == 0, (B, TB)

    # Explicit scoped-VMEM limit from the accounted footprint (+ headroom),
    # clamped to the physical capacity of the current generation.
    footprint = _footprint_bytes(TB, S, F, Hp, x_item, out_item, feat_bufs)
    vmem_limit = max(32 << 20,
                     min(int(footprint * 1.5) + (4 << 20), _vmem_capacity_bytes()))

    def _run(optimized):
        # `optimized`: single-buffered constant-index weights (pl.Buffered(1))
        # and the 3-D dot_general.  The conservative path uses defaults that
        # are guaranteed to lower on any recent jax.
        w_kw = {"pipeline_mode": pl.Buffered(1)} if optimized else {}
        feat_kw = ({"pipeline_mode": pl.Buffered(feature_buffers)}
                   if (optimized and feature_buffers is not None) else {})
        kernel = functools.partial(attention_head_kernel,
                                   fused_3d_matmul=optimized)
        return pl.pallas_call(
            kernel,
            out_shape=jax.ShapeDtypeStruct((B, F), out_dtype),
            grid_spec=pltpu.PrefetchScalarGridSpec(
                num_scalar_prefetch=0,
                grid=(B // TB,),
                in_specs=[
                    pl.BlockSpec((TB, S, F), lambda b: (b, 0, 0), **feat_kw),
                    pl.BlockSpec((F, Hp), lambda b: (0, 0), **w_kw),   # W (resident)
                    pl.BlockSpec((1, Hp), lambda b: (0, 0), **w_kw),   # W bias
                    pl.BlockSpec((1, Hp), lambda b: (0, 0), **w_kw),   # V row
                ],
                out_specs=pl.BlockSpec((TB, F), lambda b: (b, 0)),
            ),
            compiler_params=pltpu.CompilerParams(
                dimension_semantics=("parallel",),
                vmem_limit_bytes=vmem_limit,
            ),
        )(features_c, w_c, bw2, v_row)

    try:
        return _run(True)
    except Exception:
        # Fallback for jax versions where pipeline_mode on the pallas_call
        # grid or the 3-D dot_general is unsupported: identical math.
        return _run(False)


def attention_head_ref(features, w, bw, v, bv):
    att = jnp.tanh(features @ w + bw)            # (B, S, H)
    score = att @ v + bv                         # (B, S, 1)
    attn_w = jax.nn.softmax(score, axis=1)       # softmax over the seq axis
    return jnp.sum(attn_w * features, axis=1)    # (B, F)


if __name__ == "__main__":
    B, S, F, H = 2, 8, 32, 16

    key = jax.random.PRNGKey(0)
    k_x, k_w, k_bw, k_v, k_bv = jax.random.split(key, 5)

    features = jax.random.normal(k_x, (B, S, F), dtype=jnp.float32)
    # nn.Linear(in_features=F, hidden_dim=H): weight (H, F) -> stored as (F, H)
    w = jax.random.normal(k_w, (F, H), dtype=jnp.float32) * 0.1
    bw = jax.random.normal(k_bw, (H,), dtype=jnp.float32) * 0.1
    # nn.Linear(H, 1): weight (1, H) -> stored as (H, 1)
    v = jax.random.normal(k_v, (H, 1), dtype=jnp.float32) * 0.1
    bv = jax.random.normal(k_bv, (1,), dtype=jnp.float32) * 0.1

    ref = attention_head_ref(features, w, bw, v, bv)

    # f32 compute path: tight numerical check against the reference.
    out_f32 = jax.block_until_ready(
        attention_head(features, w, bw, v, bv, compute_dtype=None))
    assert out_f32.shape == (B, F)
    assert jnp.allclose(out_f32, ref, rtol=1e-5, atol=1e-5), (
        f"f32 max abs err {jnp.max(jnp.abs(out_f32 - ref))}")

    # Default (bf16 compute) path: looser tolerance covers bf16 rounding of
    # the features / W / att streams; accumulation inside the kernel is f32.
    out_bf16 = jax.block_until_ready(attention_head(features, w, bw, v, bv))
    assert out_bf16.shape == (B, F)
    assert jnp.allclose(out_bf16, ref, rtol=5e-2, atol=5e-2), (
        f"bf16 max abs err {jnp.max(jnp.abs(out_bf16 - ref))}")

    print("KERNEL_OK")
</pallas_src>

<mosaic_0001>
module attributes {stable_mosaic.version = 11 : i64} {
  func.func @attention_head_kernel(%arg0: i32, %arg1: memref<2x8x32xf32, #tpu.memory_space<vmem>>, %arg2: memref<32x128xf32, #tpu.memory_space<vmem>>, %arg3: memref<1x128xf32, #tpu.memory_space<vmem>>, %arg4: memref<1x128xf32, #tpu.memory_space<vmem>>, %arg5: memref<2x32xf32, #tpu.memory_space<vmem>>) attributes {dimension_semantics = [#tpu.dimension_semantics<parallel>], iteration_bounds = array<i64: 1>, scalar_prefetch = 0 : i64, scratch_operands = 0 : i64, tpu.core_type = #tpu.core_type<tc>, window_params = [{transform_indices = @transform_0, window_bounds = array<i64: 2, 8, 32>}, {pipeline_mode = #tpu.pipeline_mode<synchronous>, transform_indices = @transform_1, window_bounds = array<i64: 32, 128>}, {pipeline_mode = #tpu.pipeline_mode<synchronous>, transform_indices = @transform_2, window_bounds = array<i64: 1, 128>}, {pipeline_mode = #tpu.pipeline_mode<synchronous>, transform_indices = @transform_3, window_bounds = array<i64: 1, 128>}, {transform_indices = @transform_4, window_bounds = array<i64: 2, 32>}]} {
    %c0 = arith.constant 0 : index
    %c0_0 = arith.constant 0 : index
    %c0_1 = arith.constant 0 : index
    %0 = vector.load %arg1[%c0, %c0_0, %c0_1] : memref<2x8x32xf32, #tpu.memory_space<vmem>>, vector<2x8x32xf32>
    %c0_2 = arith.constant 0 : index
    %c0_3 = arith.constant 0 : index
    %1 = vector.load %arg2[%c0_2, %c0_3] : memref<32x128xf32, #tpu.memory_space<vmem>>, vector<32x128xf32>
    %cst = arith.constant dense<0.000000e+00> : vector<2x8x128xf32>
    %2 = tpu.matmul %0, %1, %cst {dimension_numbers = #tpu.dot_dimension_numbers<[2], [0], [0, 1], [1], [0, 0, 0, 1, 1, 1], [], []>} : vector<2x8x32xf32>, vector<32x128xf32>, vector<2x8x128xf32> -> vector<2x8x128xf32>
    %c0_4 = arith.constant 0 : index
    %c0_5 = arith.constant 0 : index
    %3 = vector.load %arg3[%c0_4, %c0_5] : memref<1x128xf32, #tpu.memory_space<vmem>>, vector<1x128xf32>
    %4 = vector.shape_cast %3 : vector<1x128xf32> to vector<1x1x128xf32>
    %5 = vector.broadcast %4 : vector<1x1x128xf32> to vector<2x8x128xf32>
    %6 = arith.addf %2, %5 : vector<2x8x128xf32>
    %7 = math.tanh %6 : vector<2x8x128xf32>
    %c0_6 = arith.constant 0 : index
    %c0_7 = arith.constant 0 : index
    %8 = vector.load %arg4[%c0_6, %c0_7] : memref<1x128xf32, #tpu.memory_space<vmem>>, vector<1x128xf32>
    %9 = vector.shape_cast %8 : vector<1x128xf32> to vector<1x1x128xf32>
    %10 = vector.broadcast %9 : vector<1x1x128xf32> to vector<2x8x128xf32>
    %11 = arith.mulf %7, %10 : vector<2x8x128xf32>
    %cst_8 = arith.constant dense<0.000000e+00> : vector<2x8xf32>
    %12 = vector.multi_reduction <add>, %11, %cst_8 [2] : vector<2x8x128xf32> to vector<2x8xf32>
    %cst_9 = arith.constant dense<0xFF800000> : vector<2xf32>
    %13 = vector.multi_reduction <maximumf>, %12, %cst_9 [1] : vector<2x8xf32> to vector<2xf32>
    %14 = vector.shape_cast %13 : vector<2xf32> to vector<2x1xf32>
    %15 = vector.broadcast %14 : vector<2x1xf32> to vector<2x8xf32>
    %16 = arith.subf %12, %15 : vector<2x8xf32>
    %17 = math.exp %16 : vector<2x8xf32>
    %cst_10 = arith.constant dense<0.000000e+00> : vector<2xf32>
    %18 = vector.multi_reduction <add>, %17, %cst_10 [1] : vector<2x8xf32> to vector<2xf32>
    %19 = vector.shape_cast %18 : vector<2xf32> to vector<2x1xf32>
    %20 = tpu.reciprocal %19 : vector<2x1xf32> -> vector<2x1xf32>
    %21 = vector.broadcast %20 : vector<2x1xf32> to vector<2x8xf32>
    %22 = arith.mulf %17, %21 : vector<2x8xf32>
    %23 = vector.shape_cast %22 : vector<2x8xf32> to vector<2x8x1xf32>
    %24 = vector.broadcast %23 : vector<2x8x1xf32> to vector<2x8x32xf32>
    %25 = arith.mulf %24, %0 : vector<2x8x32xf32>
    %cst_11 = arith.constant dense<0.000000e+00> : vector<2x32xf32>
    %26 = vector.multi_reduction <add>, %25, %cst_11 [1] : vector<2x8x32xf32> to vector<2x32xf32>
    %c0_12 = arith.constant 0 : index
    %c0_13 = arith.constant 0 : index
    %27 = vector.load %arg5[%c0_12, %c0_13] : memref<2x32xf32, #tpu.memory_space<vmem>>, vector<2x32xf32>
    tpu.vector_store %arg5[%c0_12, %c0_13], %26 {strides = array<i32>} : memref<2x32xf32, #tpu.memory_space<vmem>>, vector<2x32xf32>,
    return
  }
  func.func @transform_0(%arg0: i32) -> (i32, i32, i32) {
    %c0_i32 = arith.constant 0 : i32
    %c0_i32_0 = arith.constant 0 : i32
    %c0_i32_1 = arith.constant 0 : i32
    return %arg0, %c0_i32, %c0_i32_0 : i32, i32, i32
  }
  func.func @transform_1(%arg0: i32) -> (i32, i32) {
    %c0_i32 = arith.constant 0 : i32
    %c0_i32_0 = arith.constant 0 : i32
    %c0_i32_1 = arith.constant 0 : i32
    return %c0_i32, %c0_i32_0 : i32, i32
  }
  func.func @transform_2(%arg0: i32) -> (i32, i32) {
    %c0_i32 = arith.constant 0 : i32
    %c0_i32_0 = arith.constant 0 : i32
    %c0_i32_1 = arith.constant 0 : i32
    return %c0_i32, %c0_i32_0 : i32, i32
  }
  func.func @transform_3(%arg0: i32) -> (i32, i32) {
    %c0_i32 = arith.constant 0 : i32
    %c0_i32_0 = arith.constant 0 : i32
    %c0_i32_1 = arith.constant 0 : i32
    return %c0_i32, %c0_i32_0 : i32, i32
  }
  func.func @transform_4(%arg0: i32) -> (i32, i32) {
    %c0_i32 = arith.constant 0 : i32
    %c0_i32_0 = arith.constant 0 : i32
    return %arg0, %c0_i32 : i32, i32
  }
}

module attributes {stable_mosaic.version = 11 : i64} {
  func.func @attention_head_kernel(%arg0: i32, %arg1: memref<2x8x32xf32, #tpu.memory_space<vmem>>, %arg2: memref<32x128xf32, #tpu.memory_space<vmem>>, %arg3: memref<1x128xf32, #tpu.memory_space<vmem>>, %arg4: memref<1x128xf32, #tpu.memory_space<vmem>>, %arg5: memref<2x32xf32, #tpu.memory_space<vmem>>) attributes {dimension_semantics = [#tpu.dimension_semantics<parallel>], iteration_bounds = array<i64: 1>, scalar_prefetch = 0 : i64, scratch_operands = 0 : i64, tpu.core_type = #tpu.core_type<tc>, window_params = [{transform_indices = @transform_0, window_bounds = array<i64: 2, 8, 32>}, {pipeline_mode = #tpu.pipeline_mode<synchronous>, transform_indices = @transform_1, window_bounds = array<i64: 32, 128>}, {pipeline_mode = #tpu.pipeline_mode<synchronous>, transform_indices = @transform_2, window_bounds = array<i64: 1, 128>}, {pipeline_mode = #tpu.pipeline_mode<synchronous>, transform_indices = @transform_3, window_bounds = array<i64: 1, 128>}, {transform_indices = @transform_4, window_bounds = array<i64: 2, 32>}]} {
    %c0 = arith.constant 0 : index
    %c0_0 = arith.constant 0 : index
    %c0_1 = arith.constant 0 : index
    %0 = vector.load %arg1[%c0, %c0_0, %c0_1] : memref<2x8x32xf32, #tpu.memory_space<vmem>>, vector<2x8x32xf32>
    %1 = vector.shape_cast %0 : vector<2x8x32xf32> to vector<16x32xf32>
    %c0_2 = arith.constant 0 : index
    %c0_3 = arith.constant 0 : index
    %2 = vector.load %arg2[%c0_2, %c0_3] : memref<32x128xf32, #tpu.memory_space<vmem>>, vector<32x128xf32>
    %cst = arith.constant dense<0.000000e+00> : vector<16x128xf32>
    %3 = tpu.matmul %1, %2, %cst {dimension_numbers = #tpu.dot_dimension_numbers<[1], [0], [0], [1], [0, 0, 1, 1], [], []>} : vector<16x32xf32>, vector<32x128xf32>, vector<16x128xf32> -> vector<16x128xf32>
    %4 = vector.shape_cast %3 : vector<16x128xf32> to vector<2x8x128xf32>
    %c0_4 = arith.constant 0 : index
    %c0_5 = arith.constant 0 : index
    %5 = vector.load %arg3[%c0_4, %c0_5] : memref<1x128xf32, #tpu.memory_space<vmem>>, vector<1x128xf32>
    %6 = vector.shape_cast %5 : vector<1x128xf32> to vector<1x1x128xf32>
    %7 = vector.broadcast %6 : vector<1x1x128xf32> to vector<2x8x128xf32>
    %8 = arith.addf %4, %7 : vector<2x8x128xf32>
    %9 = math.tanh %8 : vector<2x8x128xf32>
    %c0_6 = arith.constant 0 : index
    %c0_7 = arith.constant 0 : index
    %10 = vector.load %arg4[%c0_6, %c0_7] : memref<1x128xf32, #tpu.memory_space<vmem>>, vector<1x128xf32>
    %11 = vector.shape_cast %10 : vector<1x128xf32> to vector<1x1x128xf32>
    %12 = vector.broadcast %11 : vector<1x1x128xf32> to vector<2x8x128xf32>
    %13 = arith.mulf %9, %12 : vector<2x8x128xf32>
    %cst_8 = arith.constant dense<0.000000e+00> : vector<2x8xf32>
    %14 = vector.multi_reduction <add>, %13, %cst_8 [2] : vector<2x8x128xf32> to vector<2x8xf32>
    %cst_9 = arith.constant dense<0xFF800000> : vector<2xf32>
    %15 = vector.multi_reduction <maximumf>, %14, %cst_9 [1] : vector<2x8xf32> to vector<2xf32>
    %16 = vector.shape_cast %15 : vector<2xf32> to vector<2x1xf32>
    %17 = vector.broadcast %16 : vector<2x1xf32> to vector<2x8xf32>
    %18 = arith.subf %14, %17 : vector<2x8xf32>
    %19 = math.exp %18 : vector<2x8xf32>
    %cst_10 = arith.constant dense<0.000000e+00> : vector<2xf32>
    %20 = vector.multi_reduction <add>, %19, %cst_10 [1] : vector<2x8xf32> to vector<2xf32>
    %21 = vector.shape_cast %20 : vector<2xf32> to vector<2x1xf32>
    %22 = tpu.reciprocal %21 : vector<2x1xf32> -> vector<2x1xf32>
    %23 = vector.broadcast %22 : vector<2x1xf32> to vector<2x8xf32>
    %24 = arith.mulf %19, %23 : vector<2x8xf32>
    %25 = vector.shape_cast %24 : vector<2x8xf32> to vector<2x8x1xf32>
    %26 = vector.broadcast %25 : vector<2x8x1xf32> to vector<2x8x32xf32>
    %27 = arith.mulf %26, %0 : vector<2x8x32xf32>
    %cst_11 = arith.constant dense<0.000000e+00> : vector<2x32xf32>
    %28 = vector.multi_reduction <add>, %27, %cst_11 [1] : vector<2x8x32xf32> to vector<2x32xf32>
    %c0_12 = arith.constant 0 : index
    %c0_13 = arith.constant 0 : index
    %29 = vector.load %arg5[%c0_12, %c0_13] : memref<2x32xf32, #tpu.memory_space<vmem>>, vector<2x32xf32>
    tpu.vector_store %arg5[%c0_12, %c0_13], %28 {strides = array<i32>} : memref<2x32xf32, #tpu.memory_space<vmem>>, vector<2x32xf32>,
    return
  }
  func.func @transform_0(%arg0: i32) -> (i32, i32, i32) {
    %c0_i32 = arith.constant 0 : i32
    %c0_i32_0 = arith.constant 0 : i32
    %c0_i32_1 = arith.constant 0 : i32
    return %arg0, %c0_i32, %c0_i32_0 : i32, i32, i32
  }
  func.func @transform_1(%arg0: i32) -> (i32, i32) {
    %c0_i32 = arith.constant 0 : i32
    %c0_i32_0 = arith.constant 0 : i32
    %c0_i32_1 = arith.constant 0 : i32
    return %c0_i32, %c0_i32_0 : i32, i32
  }
  func.func @transform_2(%arg0: i32) -> (i32, i32) {
    %c0_i32 = arith.constant 0 : i32
    %c0_i32_0 = arith.constant 0 : i32
    %c0_i32_1 = arith.constant 0 : i32
    return %c0_i32, %c0_i32_0 : i32, i32
  }
  func.func @transform_3(%arg0: i32) -> (i32, i32) {
    %c0_i32 = arith.constant 0 : i32
    %c0_i32_0 = arith.constant 0 : i32
    %c0_i32_1 = arith.constant 0 : i32
    return %c0_i32, %c0_i32_0 : i32, i32
  }
  func.func @transform_4(%arg0: i32) -> (i32, i32) {
    %c0_i32 = arith.constant 0 : i32
    %c0_i32_0 = arith.constant 0 : i32
    return %arg0, %c0_i32 : i32, i32
  }
}

</mosaic_0001>

<bundles_post_ra>
// kernel: tpu_custom_call.1
= control target key start
LH: loop header
LB: loop body
LE: loop exit
PB: predicated region body
PF: predicated region fallthrough
CT: control target
= control target key end

     0   :  { %9 = vsyncpa [#allocation3], 0  ;;  %s380_s0 = inlined_call_operand.hbm [shape: f32[2,8,32], index: 0, kind: input, shape index: {}]   ;;  %s381_s1 = inlined_call_operand.hbm [shape: f32[32,128], index: 1, kind: input, shape index: {}]   ;;  %s382_s2 = inlined_call_operand.vmem [shape: f32[1,128], index: 2, kind: input, shape index: {}]   ;;  %s383_s3 = inlined_call_operand.vmem [shape: f32[1,128], index: 3, kind: input, shape index: {}]   ;;  %s384_s4 = inlined_call_operand.hbm [shape: f32[2,32], index: 4, kind: output, shape index: {}]  }
   0x1   :  { %10 = vsyncpa [#allocation6], 0 }
   0x2   :  { %11 = vsyncpa [#allocation4], 0  ;;  %s16_s17 = sshll.u32 %s380_s0, 4  ;;  %s317_s18 = smov [#allocation2]   ;;  %s17_s17 = int_to_ptr.hbm [resolvable:$true] %s16_s17 }
   0x3   :  { %s18_s19 = sshll.u32 %s317_s18, 4  ;;  %s29_s22 = sshll.u32 %s381_s1, 4  ;;  %s19_s19 = int_to_ptr.vmem [resolvable:$true] %s18_s19  ;;  %s30_s22 = int_to_ptr.hbm [resolvable:$true] %s29_s22 }
   0x4   :  { %s318_s23 = smov 128   ;;  %s319_s24 = smov 8  }
   0x5   :  { %24 = dma.hbm_to_vmem [thread:$0]  %s17_s17, 256, %s19_s19, [#allocation3], %s318_s23, %s318_s23, %s319_s24  }
   0x6   :  { %s320_s25 = smov [#allocation5]  }
   0x7   :  { %s31_s26 = sshll.u32 %s320_s25, 4  ;;  %s32_s26 = int_to_ptr.vmem [resolvable:$true] %s31_s26 }
   0x8   :  { %37 = dma.hbm_to_vmem [thread:$0]  %s30_s22, 512, %s32_s26, [#allocation6], %s318_s23, %s318_s23, %s319_s24  }
   0x9   :  { %311 = dma.done.wait [#allocation3], 256  }
   0xa   :  { %312 = vsyncadd [#allocation3], 4294967040 }
   0xb   :  { %313 = dma.done.wait [#allocation6], 512  }
   0xc   :  { %314 = vsyncadd [#allocation6], 4294966784  ;;  %v55_v0 = vld [vmem:[#allocation5 + $0x18] sm:$0xff]  ;;  %v54_v1 = vld [vmem:[#allocation5 + $0x10] sm:$0xff]  ;;  %vm60_vm0 = vcmask 261120   ;;  %v104_v17 = vlaneseq  ;;  %vm108_vm1 = vcmask 1041409  }
   0xd   :  { %79 = vmatpush.msra.mxu0 %v55_v0  ;;  %214 = vmatpush.msra.mxu1 %v55_v0  ;;  %v53_v2 = vld [vmem:[#allocation5 + $0x8] sm:$0xff]  ;;  %v52_v3 = vld [vmem:[#allocation5] sm:$0xff]  ;;  %v354_v4 = vld [vmem:[#allocation2] sm:$0xff]  ;;  %vm111_vm2 = vcmask 58368   ;;  %v321_v24 = vmov 0   ;;  %s201_s5 = sshll.u32 %s384_s4, 4  ;;  %s202_s5 = int_to_ptr.hbm [resolvable:$true] %s201_s5 }
   0xe   :  { %v356_v5 = vld [vmem:[#allocation2 + $0x8] sm:$0xff]  ;;  %v227_v6 = vld [vmem:[%s382_s2] ss:$0 sm:$0xff]  ;;  %v105_v18 = vand.u32 127, %v104_v17  ;;  %225 = vset.pattern.permute.xlu2 %v321_v24  ;;  %224 = vset.pattern.permute.xlu1 %v321_v24  ;;  %s322_s2 = smov [#allocation7]   ;;  %vm192_vm7 = vcmask 254976  }
   0xf   :  { %80 = vmatpush.msra.mxu0 %v54_v1  ;;  %215 = vmatpush.msra.mxu1 %v54_v1  ;;  %v228_v11 = vld [vmem:[%s383_s3] ss:$0 sm:$0xff]  ;;  %s199_s3 = sshll.u32 %s322_s2, 4  ;;  %s200_s3 = int_to_ptr.vmem [resolvable:$true] %s199_s3 }
  0x10   :  { %226 = vset.pattern.permute.xlu0 %v321_v24 }
  0x11   :  { %81 = vmatpush.msra.mxu0 %v53_v2  ;;  %216 = vmatpush.msra.mxu1 %v53_v2 }
  0x13   :  { %82 = vmatpush.msra.mxu0 %v52_v3  ;;  %217 = vmatpush.msra.mxu1 %v52_v3 }
  0x14   :  { %212 = vmatmul.msk.f32.vlgmr.msra.gmra.mxu0 %vm60_vm0, %v354_v4  ;;  %213 = vmatmul.msk.f32.vlgmr.msra.gmra.mxu1 %vm60_vm0, %v356_v5 }
  0x91   :  { %v84_v7 = vpop.f32.mrf.mxu0  ;;  %v87_v8 = vpop.f32.mrf.mxu1 }
  0x92   :  { %v85_v9 = vadd.f32 %v227_v6, %v84_v7  ;;  %v88_v10 = vadd.f32 %v227_v6, %v87_v8 }
  0x94   :  { %229 = vtanh.f32 %v85_v9 }
  0x95   :  { %231 = vtanh.f32 %v88_v10 }
  0x9a   :  { %v230_v12 = vpop.eup %229 }
  0x9b   :  { %v96_v13 = vmul.f32 %v230_v12, %v228_v11  ;;  %v232_v14 = vpop.eup %231 }
  0x9c   :  { %v97_v15 = vmul.f32 %v232_v14, %v228_v11 }
  0x9d   :  { %98 = vadd.xlane.f32.xlu0 %v96_v13 }
  0xa5   :  { %100 = vadd.xlane.f32.xlu0 %v97_v15 }
 0x110   :  { %v99_v16 = vpop.xlane.xlu0 %98 }
 0x111   :  { %v106_v20 = vperm.slane %v99_v16, %v105_v18 }
 0x118   :  { %v101_v19 = vpop.xlane.xlu0 %100 }
 0x119   :  { %v107_v21 = vperm.slane %v101_v19, %v105_v18 }
 0x11b   :  { %v109_v22 = vsel %vm108_vm1, %v107_v21, %v106_v20 }
 0x11c   :  { %v112_v23 = vsel %vm111_vm2, %v109_v22, -inf }
 0x11d   :  { %113 = vmax.xlane.f32.xlu1 %v112_v23 }
 0x190   :  { %v114_v25 = vpop.xlane.xlu1 %113 }
 0x191   :  { %v116_v26 = vperm.slane %v114_v25, 0  ;;  %v117_v27 = vperm.slane %v114_v25, 1 }
 0x193   :  { %v120_v28 = vsub.f32 %v99_v16, %v116_v26  ;;  %v121_v29 = vsub.f32 %v101_v19, %v117_v27 }
 0x195   :  { %v122_v30 = vmul.f32 1.442695, %v120_v28  ;;  %v124_v31 = vmul.f32 1.442695, %v121_v29 }
 0x197   :  { %233 = vpow2.f32 %v122_v30 }
 0x198   :  { %235 = vpow2.f32 %v124_v31 }
 0x19d   :  { %v234_v32 = vpop.eup %233 }
 0x19e   :  { %v236_v33 = vpop.eup %235  ;;  %129 = vperm.xlu1 %224, %v234_v32  }
 0x19f   :  { %132 = vperm.xlu2 %225, %v236_v33  }
 0x1f9   :  { %v133_v34 = vpop.permute.xlu2 %132 }
 0x1fa   :  { %v135_v36 = vperm.slane %v133_v34, %v105_v18 }
 0x210   :  { %v130_v35 = vpop.permute.xlu1 %129 }
 0x211   :  { %v134_v37 = vperm.slane %v130_v35, %v105_v18 }
 0x213   :  { %v136_v38 = vsel %vm108_vm1, %v135_v36, %v134_v37 }
 0x214   :  { %v138_v39 = vsel %vm111_vm2, %v136_v38, 0.0 }
 0x215   :  { %139 = vadd.xlane.f32.xlu2 %v138_v39 }
 0x288   :  { %v140_v40 = vpop.xlane.xlu2 %139 }
 0x289   :  { %237 = vrcp.f32 %v140_v40  ;;  %v152_v44 = vand.u32 2147483648, %v140_v40  ;;  %v150_v46 = vand.u32 2147483647, %v140_v40  ;;  %vm146_vm4 = vweird.f32 %v140_v40 }
 0x28b   :  { %v153_v48 = vor.u32 1.1754944e-38, %v152_v44  ;;  %vm151_vm6 = vcmp.eq.f32.partialorder %v150_v46, 8.507059e+37 }
 0x28f   :  { %v238_v41 = vpop.eup %237 }
 0x290   :  { %v142_v42 = vmul.f32 %v238_v41, %v140_v40  ;;  %vm147_vm3 = vweird.f32 %v238_v41 }
 0x291   :  { %vm148_vm5 = vmor %vm146_vm4, %vm147_vm3 }
 0x292   :  { %v143_v43 = vsub.f32 1.0, %v142_v42 }
 0x294   :  { %v144_v45 = vmul.f32 %v238_v41, %v143_v43 }
 0x296   :  { %v145_v47 = vadd.f32 %v238_v41, %v144_v45 }
 0x298   :  { %v149_v49 = vsel %vm148_vm5, %v238_v41, %v145_v47 }
 0x299   :  { %v154_v50 = vsel %vm151_vm6, %v153_v48, %v149_v49 }
 0x29a   :  { %v157_v51 = vperm.slane %v154_v50, 1  ;;  %v156_v52 = vperm.slane %v154_v50, 0 }
 0x29c   :  { %v161_v53 = vmul.f32 %v236_v33, %v157_v51  ;;  %v160_v54 = vmul.f32 %v234_v32, %v156_v52 }
 0x29e   :  { %169 = vperm.xlu1 %224, %v161_v53   ;;  %164 = vperm.xlu0 %226, %v160_v54  }
 0x310   :  { %v170_v55 = vpop.permute.xlu1 %169  ;;  %v165_v56 = vpop.permute.xlu0 %164 }
 0x311   :  { %v173_v57 = vmul.f32 %v170_v55, %v356_v5  ;;  %v172_v58 = vmul.f32 %v165_v56, %v354_v4 }
 0x313   :  { %v181_v59 = vsel %vm60_vm0, %v173_v57, 0.0  ;;  %v174_v60 = vsel %vm60_vm0, %v172_v58, 0.0 }
 0x314   :  { %v182_v61 = vrot.slane %v181_v59, 4  ;;  %v175_v62 = vrot.slane %v174_v60, 4 }
 0x316   :  { %v183_v63 = vadd.f32 %v182_v61, %v181_v59  ;;  %v176_v0 = vadd.f32 %v175_v62, %v174_v60 }
 0x318   :  { %v184_v1 = vrot.slane %v183_v63, 2  ;;  %v177_v2 = vrot.slane %v176_v0, 2 }
 0x31a   :  { %v185_v3 = vadd.f32 %v184_v1, %v183_v63  ;;  %v178_v6 = vadd.f32 %v177_v2, %v176_v0 }
 0x31c   :  { %v186_v7 = vrot.slane %v185_v3, 1  ;;  %v179_v8 = vrot.slane %v178_v6, 1 }
 0x31e   :  { %v187_v4 = vadd.f32 %v186_v7, %v185_v3  ;;  %v180_v5 = vadd.f32 %v179_v8, %v178_v6 }
 0x320   :  { %v190_v9 = vsel %vm108_vm1, %v187_v4, %v180_v5 }
 0x321   :  { %193 = vst.msk [vmem:[#allocation7] sm:$0x3] %vm192_vm7, %v190_v9 }
 0x322   :  { %204 = dma.vmem_to_hbm [thread:$0]  %s200_s3, 32, %s202_s5, [#allocation4]  }
 0x323   :  { %315 = dma.done.wait [#allocation4], 32  }
 0x324   :  { %316 = vsyncadd [#allocation4], 4294967264 }
 0x325   :  { %209 = vsyncpa [#allocation3], 1 }
 0x326   :  { %210 = vsyncpa [#allocation6], 1 }
 0x327   :  { %211 = vsyncpa [#allocation4], 1 }

// kernel: tpu_custom_call.1
= control target key start
LH: loop header
LB: loop body
LE: loop exit
PB: predicated region body
PF: predicated region fallthrough
CT: control target
= control target key end

     0   :  { %9 = vsyncpa [#allocation3], 0  ;;  %s382_s0 = inlined_call_operand.hbm [shape: f32[2,8,32], index: 0, kind: input, shape index: {}]   ;;  %s383_s1 = inlined_call_operand.hbm [shape: f32[32,128], index: 1, kind: input, shape index: {}]   ;;  %s384_s2 = inlined_call_operand.vmem [shape: f32[1,128], index: 2, kind: input, shape index: {}]   ;;  %s385_s3 = inlined_call_operand.vmem [shape: f32[1,128], index: 3, kind: input, shape index: {}]   ;;  %s386_s4 = inlined_call_operand.hbm [shape: f32[2,32], index: 4, kind: output, shape index: {}]  }
   0x1   :  { %10 = vsyncpa [#allocation6], 0 }
   0x2   :  { %11 = vsyncpa [#allocation4], 0  ;;  %s16_s17 = sshll.u32 %s382_s0, 4  ;;  %s319_s18 = smov [#allocation2]   ;;  %s17_s17 = int_to_ptr.hbm [resolvable:$true] %s16_s17 }
   0x3   :  { %s18_s19 = sshll.u32 %s319_s18, 4  ;;  %s29_s22 = sshll.u32 %s383_s1, 4  ;;  %s19_s19 = int_to_ptr.vmem [resolvable:$true] %s18_s19  ;;  %s30_s22 = int_to_ptr.hbm [resolvable:$true] %s29_s22 }
   0x4   :  { %s320_s23 = smov 128   ;;  %s321_s24 = smov 8  }
   0x5   :  { %24 = dma.hbm_to_vmem [thread:$0]  %s17_s17, 256, %s19_s19, [#allocation3], %s320_s23, %s320_s23, %s321_s24  }
   0x6   :  { %s322_s25 = smov [#allocation5]  }
   0x7   :  { %s31_s26 = sshll.u32 %s322_s25, 4  ;;  %s32_s26 = int_to_ptr.vmem [resolvable:$true] %s31_s26 }
   0x8   :  { %37 = dma.hbm_to_vmem [thread:$0]  %s30_s22, 512, %s32_s26, [#allocation6], %s320_s23, %s320_s23, %s321_s24  }
   0x9   :  { %313 = dma.done.wait [#allocation3], 256  }
   0xa   :  { %314 = vsyncadd [#allocation3], 4294967040 }
   0xb   :  { %315 = dma.done.wait [#allocation6], 512  }
   0xc   :  { %316 = vsyncadd [#allocation6], 4294966784  ;;  %v55_v0 = vld [vmem:[#allocation5 + $0x18] sm:$0xff]  ;;  %v54_v1 = vld [vmem:[#allocation5 + $0x10] sm:$0xff]  ;;  %vm56_vm0 = vcmask 261120   ;;  %v106_v17 = vlaneseq  ;;  %vm110_vm1 = vcmask 1041409  }
   0xd   :  { %75 = vmatpush.msra.mxu0 %v55_v0  ;;  %216 = vmatpush.msra.mxu1 %v55_v0  ;;  %v53_v2 = vld [vmem:[#allocation5 + $0x8] sm:$0xff]  ;;  %v52_v3 = vld [vmem:[#allocation5] sm:$0xff]  ;;  %v356_v4 = vld [vmem:[#allocation2] sm:$0xff]  ;;  %vm113_vm2 = vcmask 58368   ;;  %v323_v24 = vmov 0   ;;  %s203_s5 = sshll.u32 %s386_s4, 4  ;;  %s204_s5 = int_to_ptr.hbm [resolvable:$true] %s203_s5 }
   0xe   :  { %v358_v5 = vld [vmem:[#allocation2 + $0x8] sm:$0xff]  ;;  %v229_v6 = vld [vmem:[%s384_s2] ss:$0 sm:$0xff]  ;;  %v107_v18 = vand.u32 127, %v106_v17  ;;  %227 = vset.pattern.permute.xlu2 %v323_v24  ;;  %226 = vset.pattern.permute.xlu1 %v323_v24  ;;  %s324_s2 = smov [#allocation7]   ;;  %vm194_vm7 = vcmask 254976  }
   0xf   :  { %76 = vmatpush.msra.mxu0 %v54_v1  ;;  %217 = vmatpush.msra.mxu1 %v54_v1  ;;  %v230_v11 = vld [vmem:[%s385_s3] ss:$0 sm:$0xff]  ;;  %s201_s3 = sshll.u32 %s324_s2, 4  ;;  %s202_s3 = int_to_ptr.vmem [resolvable:$true] %s201_s3 }
  0x10   :  { %228 = vset.pattern.permute.xlu0 %v323_v24 }
  0x11   :  { %77 = vmatpush.msra.mxu0 %v53_v2  ;;  %218 = vmatpush.msra.mxu1 %v53_v2 }
  0x13   :  { %78 = vmatpush.msra.mxu0 %v52_v3  ;;  %219 = vmatpush.msra.mxu1 %v52_v3 }
  0x14   :  { %214 = vmatmul.msk.f32.vlgmr.msra.gmra.mxu0 %vm56_vm0, %v356_v4  ;;  %215 = vmatmul.msk.f32.vlgmr.msra.gmra.mxu1 %vm56_vm0, %v358_v5 }
  0x91   :  { %v80_v7 = vpop.f32.mrf.mxu0  ;;  %v83_v8 = vpop.f32.mrf.mxu1 }
  0x92   :  { %v90_v9 = vadd.f32 %v229_v6, %v80_v7  ;;  %v91_v10 = vadd.f32 %v229_v6, %v83_v8 }
  0x94   :  { %231 = vtanh.f32 %v90_v9 }
  0x95   :  { %233 = vtanh.f32 %v91_v10 }
  0x9a   :  { %v232_v12 = vpop.eup %231 }
  0x9b   :  { %v98_v13 = vmul.f32 %v232_v12, %v230_v11  ;;  %v234_v14 = vpop.eup %233 }
  0x9c   :  { %v99_v15 = vmul.f32 %v234_v14, %v230_v11 }
  0x9d   :  { %100 = vadd.xlane.f32.xlu0 %v98_v13 }
  0xa5   :  { %102 = vadd.xlane.f32.xlu0 %v99_v15 }
 0x110   :  { %v101_v16 = vpop.xlane.xlu0 %100 }
 0x111   :  { %v108_v20 = vperm.slane %v101_v16, %v107_v18 }
 0x118   :  { %v103_v19 = vpop.xlane.xlu0 %102 }
 0x119   :  { %v109_v21 = vperm.slane %v103_v19, %v107_v18 }
 0x11b   :  { %v111_v22 = vsel %vm110_vm1, %v109_v21, %v108_v20 }
 0x11c   :  { %v114_v23 = vsel %vm113_vm2, %v111_v22, -inf }
 0x11d   :  { %115 = vmax.xlane.f32.xlu1 %v114_v23 }
 0x190   :  { %v116_v25 = vpop.xlane.xlu1 %115 }
 0x191   :  { %v118_v26 = vperm.slane %v116_v25, 0  ;;  %v119_v27 = vperm.slane %v116_v25, 1 }
 0x193   :  { %v122_v28 = vsub.f32 %v101_v16, %v118_v26  ;;  %v123_v29 = vsub.f32 %v103_v19, %v119_v27 }
 0x195   :  { %v124_v30 = vmul.f32 1.442695, %v122_v28  ;;  %v126_v31 = vmul.f32 1.442695, %v123_v29 }
 0x197   :  { %235 = vpow2.f32 %v124_v30 }
 0x198   :  { %237 = vpow2.f32 %v126_v31 }
 0x19d   :  { %v236_v32 = vpop.eup %235 }
 0x19e   :  { %v238_v33 = vpop.eup %237  ;;  %131 = vperm.xlu1 %226, %v236_v32  }
 0x19f   :  { %134 = vperm.xlu2 %227, %v238_v33  }
 0x1f9   :  { %v135_v34 = vpop.permute.xlu2 %134 }
 0x1fa   :  { %v137_v36 = vperm.slane %v135_v34, %v107_v18 }
 0x210   :  { %v132_v35 = vpop.permute.xlu1 %131 }
 0x211   :  { %v136_v37 = vperm.slane %v132_v35, %v107_v18 }
 0x213   :  { %v138_v38 = vsel %vm110_vm1, %v137_v36, %v136_v37 }
 0x214   :  { %v140_v39 = vsel %vm113_vm2, %v138_v38, 0.0 }
 0x215   :  { %141 = vadd.xlane.f32.xlu2 %v140_v39 }
 0x288   :  { %v142_v40 = vpop.xlane.xlu2 %141 }
 0x289   :  { %239 = vrcp.f32 %v142_v40  ;;  %v154_v44 = vand.u32 2147483648, %v142_v40  ;;  %v152_v46 = vand.u32 2147483647, %v142_v40  ;;  %vm148_vm4 = vweird.f32 %v142_v40 }
 0x28b   :  { %v155_v48 = vor.u32 1.1754944e-38, %v154_v44  ;;  %vm153_vm6 = vcmp.eq.f32.partialorder %v152_v46, 8.507059e+37 }
 0x28f   :  { %v240_v41 = vpop.eup %239 }
 0x290   :  { %v144_v42 = vmul.f32 %v240_v41, %v142_v40  ;;  %vm149_vm3 = vweird.f32 %v240_v41 }
 0x291   :  { %vm150_vm5 = vmor %vm148_vm4, %vm149_vm3 }
 0x292   :  { %v145_v43 = vsub.f32 1.0, %v144_v42 }
 0x294   :  { %v146_v45 = vmul.f32 %v240_v41, %v145_v43 }
 0x296   :  { %v147_v47 = vadd.f32 %v240_v41, %v146_v45 }
 0x298   :  { %v151_v49 = vsel %vm150_vm5, %v240_v41, %v147_v47 }
 0x299   :  { %v156_v50 = vsel %vm153_vm6, %v155_v48, %v151_v49 }
 0x29a   :  { %v159_v51 = vperm.slane %v156_v50, 1  ;;  %v158_v52 = vperm.slane %v156_v50, 0 }
 0x29c   :  { %v163_v53 = vmul.f32 %v238_v33, %v159_v51  ;;  %v162_v54 = vmul.f32 %v236_v32, %v158_v52 }
 0x29e   :  { %171 = vperm.xlu1 %226, %v163_v53   ;;  %166 = vperm.xlu0 %228, %v162_v54  }
 0x310   :  { %v172_v55 = vpop.permute.xlu1 %171  ;;  %v167_v56 = vpop.permute.xlu0 %166 }
 0x311   :  { %v175_v57 = vmul.f32 %v172_v55, %v358_v5  ;;  %v174_v58 = vmul.f32 %v167_v56, %v356_v4 }
 0x313   :  { %v183_v59 = vsel %vm56_vm0, %v175_v57, 0.0  ;;  %v176_v60 = vsel %vm56_vm0, %v174_v58, 0.0 }
 0x314   :  { %v184_v61 = vrot.slane %v183_v59, 4  ;;  %v177_v62 = vrot.slane %v176_v60, 4 }
 0x316   :  { %v185_v63 = vadd.f32 %v184_v61, %v183_v59  ;;  %v178_v0 = vadd.f32 %v177_v62, %v176_v60 }
 0x318   :  { %v186_v1 = vrot.slane %v185_v63, 2  ;;  %v179_v2 = vrot.slane %v178_v0, 2 }
 0x31a   :  { %v187_v3 = vadd.f32 %v186_v1, %v185_v63  ;;  %v180_v6 = vadd.f32 %v179_v2, %v178_v0 }
 0x31c   :  { %v188_v7 = vrot.slane %v187_v3, 1  ;;  %v181_v8 = vrot.slane %v180_v6, 1 }
 0x31e   :  { %v189_v4 = vadd.f32 %v188_v7, %v187_v3  ;;  %v182_v5 = vadd.f32 %v181_v8, %v180_v6 }
 0x320   :  { %v192_v9 = vsel %vm110_vm1, %v189_v4, %v182_v5 }
 0x321   :  { %195 = vst.msk [vmem:[#allocation7] sm:$0x3] %vm194_vm7, %v192_v9 }
 0x322   :  { %206 = dma.vmem_to_hbm [thread:$0]  %s202_s3, 32, %s204_s5, [#allocation4]  }
 0x323   :  { %317 = dma.done.wait [#allocation4], 32  }
 0x324   :  { %318 = vsyncadd [#allocation4], 4294967264 }
 0x325   :  { %211 = vsyncpa [#allocation3], 1 }
 0x326   :  { %212 = vsyncpa [#allocation6], 1 }
 0x327   :  { %213 = vsyncpa [#allocation4], 1 }

</bundles_post_ra>
